<compile_context>
chip_gen: v7x
topology: tpu7x:2x2x1
jax: 0.10.0
libtpu: 0.0.40
codegen_flags: <defaults>
</compile_context>

<pallas_src>
from functools import partial

import numpy as np
import jax
import jax.numpy as jnp
from jax import lax
from jax.experimental import pallas as pl
from jax.experimental.pallas import tpu as pltpu


def find_module_kernel(q_ref, lhs_ref, rhs_ref, w1l_ref, w1r_ref, b1_ref,
                       w2_ref, b2_ref, mask_ref, o_ref, patch_ref,
                       *, ksize, width, hw, bn):
    """Per-grid-step body; Bn batch elements are packed along the lane axis.

    q_ref    : (1, C, Bn)        question reps (f32)
    lhs_ref  : (1, C, Bn*HW)     lhs feature maps, channel-major (mxu dtype)
    rhs_ref  : (1, C, Bn*HW)     rhs feature maps (mxu dtype)
    w1l_ref  : (C, C)            conv_1 weight, lhs half (mxu dtype)
    w1r_ref  : (C, C)            conv_1 weight, rhs half (mxu dtype)
    b1_ref   : (C, 1)            f32
    w2_ref   : (C, k*k*C)        conv_2 weight in im2col form (mxu dtype)
    b2_ref   : (C, 1)            f32
    mask_ref : (k*k, Bn*HW)      0/1 edge masks per tap, tiled per segment (f32)
    o_ref    : (1, C, Bn*HW)     f32 output
    patch_ref: (k*k*C, Bn*HW)    VMEM scratch for the im2col patch (mxu dtype)
    """
    C = lhs_ref.shape[1]
    bhw = lhs_ref.shape[2]
    pad = ksize // 2
    mxu_dtype = w2_ref.dtype

    # conv_1 (1x1) as two channel matmuls (no in-kernel (2C, BHW) concat copy).
    h = jnp.dot(w1l_ref[...], lhs_ref[0], preferred_element_type=jnp.float32)
    h = h + jnp.dot(w1r_ref[...], rhs_ref[0], preferred_element_type=jnp.float32)
    h = jnp.maximum(h + b1_ref[...], 0.0)                       # relu (f32)

    # Question gating: broadcast q[:, b] over that element's HW lane segment
    # (same (C,1)-over-lanes broadcast pattern as the bias add).
    qv = q_ref[0]                                                # (C, Bn)
    h = jnp.concatenate(
        [h[:, b * hw:(b + 1) * hw] * qv[:, b:b + 1] for b in range(bn)], axis=1)

    # conv_2 (kxk, 'same'): build the (k*k*C, Bn*HW) im2col patch from rolled
    # copies of h; the edge masks zero out-of-image taps, the mod-BHW roll
    # wrap-around and any cross-batch-segment spill.  Each tap is written
    # straight into the VMEM scratch, then one wide MXU matmul consumes it.
    masks = mask_ref[...]                                        # (k*k, Bn*HW)
    for dy in range(ksize):
        for dx in range(ksize):
            t = dy * ksize + dx
            delta = (dy - pad) * width + (dx - pad)
            shifted = h if delta == 0 else pltpu.roll(h, shift=(-delta) % bhw, axis=1)
            patch_ref[pl.ds(t * C, C), :] = (
                shifted * masks[t:t + 1, :]).astype(mxu_dtype)

    out = jnp.dot(w2_ref[...], patch_ref[...], preferred_element_type=jnp.float32)
    o_ref[0] = jnp.maximum(out + b2_ref[...], 0.0).astype(o_ref.dtype)   # relu


def _edge_masks(ksize, H, W):
    """(k*k, H*W) 0/1 masks: mask[t, y*W+x] = 1 iff tap t of a 'same' conv at
    output pixel (y, x) reads an in-image pixel."""
    pad = ksize // 2
    m = np.zeros((ksize * ksize, H, W), np.float32)
    for dy in range(ksize):
        for dx in range(ksize):
            sy, sx = dy - pad, dx - pad
            y0, y1 = max(0, -sy), min(H, H - sy)
            x0, x1 = max(0, -sx), min(W, W - sx)
            m[dy * ksize + dx, y0:y1, x0:x1] = 1.0
    return m.reshape(ksize * ksize, H * W)


def _default_num_steps(n):
    """1 fused grid step on single-TC parts (v5e/v6e); >=2 parallel steps on
    multi-TC parts (v7x megacore / unknown) so both TensorCores get work."""
    if n <= 1:
        return 1
    try:
        kind = jax.devices()[0].device_kind.lower()
    except Exception:
        kind = ""
    single_tc = any(s in kind for s in
                    ("v5e", "v5 lite", "v5lite", "v6e", "v6 lite", "v6lite"))
    return 1 if single_tc else min(n, 2)


def find_module_pallas(question_rep, lhs_rep, rhs_rep, w1, b1, w2, b2, ksize,
                       *, num_steps=None, mxu_dtype=jnp.bfloat16):
    """question_rep: (N, C);  lhs_rep/rhs_rep: (N, C, H, W) NCHW;
    w1: (C, 2C, 1, 1) OIHW; b1: (C,); w2: (C, C, k, k) OIHW; b2: (C,).
    Returns (N, C, H, W) float32."""
    N, C, H, W = lhs_rep.shape
    HW = H * W

    if num_steps is None:
        num_steps = _default_num_steps(N)
    num_steps = max(1, min(num_steps, N))
    Bn = -(-N // num_steps)                    # batch elements per grid step
    Np = num_steps * Bn
    BHW = Bn * HW

    # Pad batch (zeros) so it splits evenly into grid steps; sliced off below.
    if Np != N:
        padn = Np - N
        question_rep = jnp.pad(question_rep, ((0, padn), (0, 0)))
        lhs_rep = jnp.pad(lhs_rep, ((0, padn), (0, 0), (0, 0), (0, 0)))
        rhs_rep = jnp.pad(rhs_rep, ((0, padn), (0, 0), (0, 0), (0, 0)))

    def to_blocks(x):                          # (Np,C,H,W) -> (steps, C, Bn*HW)
        x = x.reshape(num_steps, Bn, C, HW)
        x = jnp.transpose(x, (0, 2, 1, 3))     # layout plumbing only
        return x.reshape(num_steps, C, BHW)

    lhs = to_blocks(lhs_rep.astype(mxu_dtype))
    rhs = to_blocks(rhs_rep.astype(mxu_dtype))
    q = jnp.transpose(question_rep.astype(jnp.float32).reshape(num_steps, Bn, C),
                      (0, 2, 1))               # (steps, C, Bn)

    # conv_1 weight (C, 2C, 1, 1) -> two (C, C) matmul LHS halves.
    w1_m = w1.reshape(C, 2 * C).astype(mxu_dtype)
    w1_lhs, w1_rhs = w1_m[:, :C], w1_m[:, C:]
    b1_m = b1.reshape(C, 1).astype(jnp.float32)
    # conv_2 weight (Cout, Cin, k, k) -> (Cout, k*k*Cin) im2col matmul LHS
    # (column block t = dy*k+dx holds the (Cout, Cin) matrix of that tap).
    w2_m = jnp.transpose(w2, (0, 2, 3, 1)).reshape(C, ksize * ksize * C)
    w2_m = w2_m.astype(mxu_dtype)
    b2_m = b2.reshape(C, 1).astype(jnp.float32)
    # Edge masks, tiled once per packed batch segment (also kills cross-segment
    # roll spill).
    masks = jnp.tile(jnp.asarray(_edge_masks(ksize, H, W)), (1, Bn))

    itemsize = jnp.dtype(mxu_dtype).itemsize
    patch_bytes = ksize * ksize * C * BHW * itemsize
    if patch_bytes > (24 << 20):
        # TODO(synk): tile HW (mask-aware halos) or split the k*k taps into accumulated groups before scaling C/HW up.
        raise NotImplementedError("im2col patch exceeds the VMEM budget; add HW/tap tiling")
    vmem_need = (patch_bytes
                 + 2 * 2 * C * BHW * itemsize       # lhs+rhs, double-buffered
                 + 2 * C * BHW * 4                  # out, double-buffered (f32)
                 + (2 * C * C + C * ksize * ksize * C) * itemsize   # weights
                 + ksize * ksize * BHW * 4          # masks
                 + (1 << 20))                       # slack
    vmem_limit = int(min(max(2 * vmem_need, 32 << 20), 64 << 20))

    flops = 2 * Np * HW * (C * 2 * C + C * C * ksize * ksize)
    bytes_accessed = int(
        lhs.size * itemsize + rhs.size * itemsize + q.size * 4
        + Np * C * HW * 4                           # output
        + (2 * C * C + C * ksize * ksize * C) * itemsize + 2 * C * 4
        + masks.size * 4)

    kernel = partial(find_module_kernel, ksize=ksize, width=W, hw=HW, bn=Bn)
    out = pl.pallas_call(
        kernel,
        out_shape=jax.ShapeDtypeStruct((num_steps, C, BHW), jnp.float32),
        grid_spec=pltpu.PrefetchScalarGridSpec(
            num_scalar_prefetch=0,
            grid=(num_steps,),
            in_specs=[
                pl.BlockSpec((1, C, Bn), lambda s: (s, 0, 0)),            # question
                pl.BlockSpec((1, C, BHW), lambda s: (s, 0, 0)),           # lhs
                pl.BlockSpec((1, C, BHW), lambda s: (s, 0, 0)),           # rhs
                pl.BlockSpec((C, C), lambda s: (0, 0)),                   # w1 lhs half
                pl.BlockSpec((C, C), lambda s: (0, 0)),                   # w1 rhs half
                pl.BlockSpec((C, 1), lambda s: (0, 0)),                   # b1
                pl.BlockSpec((C, ksize * ksize * C), lambda s: (0, 0)),   # w2 im2col
                pl.BlockSpec((C, 1), lambda s: (0, 0)),                   # b2
                pl.BlockSpec((ksize * ksize, BHW), lambda s: (0, 0)),     # edge masks
            ],
            out_specs=pl.BlockSpec((1, C, BHW), lambda s: (s, 0, 0)),
            scratch_shapes=[pltpu.VMEM((ksize * ksize * C, BHW), mxu_dtype)],
        ),
        compiler_params=pltpu.CompilerParams(
            dimension_semantics=("parallel",),      # batch halves across v7x TCs
            vmem_limit_bytes=vmem_limit),
        cost_estimate=pl.CostEstimate(
            flops=flops, transcendentals=0, bytes_accessed=bytes_accessed),
    )(q, lhs, rhs, w1_lhs, w1_rhs, b1_m, w2_m, b2_m, masks)

    # Unpack (steps, C, Bn*HW) -> NCHW.
    out = out.reshape(num_steps, C, Bn, HW)
    out = jnp.transpose(out, (0, 2, 1, 3)).reshape(Np, C, H, W)
    return out[:N]


def find_module_reference(q, lhs, rhs, w1, b1, w2, b2, k):
    """Pure-JAX reference mirroring the PyTorch forward (NCHW)."""
    dn = ('NCHW', 'OIHW', 'NCHW')
    x = jnp.concatenate([lhs, rhs], axis=1)
    h = lax.conv_general_dilated(x, w1, (1, 1), 'VALID', dimension_numbers=dn,
                                 precision=lax.Precision.HIGHEST)
    h = jnp.maximum(h + b1[None, :, None, None], 0.0)
    h = h * q[:, :, None, None]
    p = k // 2
    o = lax.conv_general_dilated(h, w2, (1, 1), [(p, p), (p, p)],
                                 dimension_numbers=dn,
                                 precision=lax.Precision.HIGHEST)
    return jnp.maximum(o + b2[None, :, None, None], 0.0)


if __name__ == "__main__":
    N, C, H, W, K = 2, 8, 16, 16, 3   # batch, dim, spatial, spatial, kernel_size

    key = jax.random.PRNGKey(0)
    kq, kl, kr, kw1, kb1, kw2, kb2 = jax.random.split(key, 7)

    question_rep = jax.random.normal(kq, (N, C), jnp.float32)
    lhs_rep = jax.random.normal(kl, (N, C, H, W), jnp.float32)
    rhs_rep = jax.random.normal(kr, (N, C, H, W), jnp.float32)

    # Deterministic synthetic parameters (shapes from nn.Conv2d in __init__).
    w1 = jax.random.normal(kw1, (C, 2 * C, 1, 1), jnp.float32) * 0.1  # conv_1.weight
    b1 = jax.random.normal(kb1, (C,), jnp.float32) * 0.1              # conv_1.bias
    w2 = jax.random.normal(kw2, (C, C, K, K), jnp.float32) * 0.1      # conv_2.weight
    b2 = jax.random.normal(kb2, (C,), jnp.float32) * 0.1              # conv_2.bias

    ref = find_module_reference(question_rep, lhs_rep, rhs_rep, w1, b1, w2, b2, K)

    # (a) f32 MXU operands, one fused grid step (Bn=N packed along lanes):
    #     exercises the lane-packed batching + tiled-mask roll-spill invariant.
    out_f32 = find_module_pallas(question_rep, lhs_rep, rhs_rep, w1, b1, w2, b2, K,
                                 num_steps=1, mxu_dtype=jnp.float32)
    out_f32 = jax.block_until_ready(out_f32)
    assert out_f32.shape == ref.shape == (N, C, H, W), (out_f32.shape, ref.shape)
    assert jnp.allclose(out_f32, ref, atol=1e-3, rtol=1e-3), float(
        jnp.max(jnp.abs(out_f32 - ref)))

    # (b) bf16 MXU operands (f32 accumulate; v6e/v7x fast path), 2 parallel
    #     grid steps (v7x megacore).  Looser tolerance for the K=72 bf16 dot.
    out_bf16 = find_module_pallas(question_rep, lhs_rep, rhs_rep, w1, b1, w2, b2, K,
                                  num_steps=2, mxu_dtype=jnp.bfloat16)
    out_bf16 = jax.block_until_ready(out_bf16)
    assert out_bf16.shape == ref.shape
    assert jnp.allclose(out_bf16, ref, atol=3e-2, rtol=3e-2), float(
        jnp.max(jnp.abs(out_bf16 - ref)))

    print("KERNEL_OK")
</pallas_src>

<mosaic_0001>
module attributes {stable_mosaic.version = 11 : i64} {
  func.func @find_module_kernel(%arg0: i32, %arg1: memref<1x8x2xf32, #tpu.memory_space<vmem>>, %arg2: memref<1x8x512xf32, #tpu.memory_space<vmem>>, %arg3: memref<1x8x512xf32, #tpu.memory_space<vmem>>, %arg4: memref<8x8xf32, #tpu.memory_space<vmem>>, %arg5: memref<8x8xf32, #tpu.memory_space<vmem>>, %arg6: memref<8x1xf32, #tpu.memory_space<vmem>>, %arg7: memref<8x72xf32, #tpu.memory_space<vmem>>, %arg8: memref<8x1xf32, #tpu.memory_space<vmem>>, %arg9: memref<9x512xf32, #tpu.memory_space<vmem>>, %arg10: memref<1x8x512xf32, #tpu.memory_space<vmem>>, %arg11: memref<72x512xf32, #tpu.memory_space<vmem>>) attributes {dimension_semantics = [#tpu.dimension_semantics<parallel>], iteration_bounds = array<i64: 1>, scalar_prefetch = 0 : i64, scratch_operands = 1 : i64, tpu.core_type = #tpu.core_type<tc>, window_params = [{transform_indices = @transform_0, window_bounds = array<i64: 1, 8, 2>}, {transform_indices = @transform_1, window_bounds = array<i64: 1, 8, 512>}, {transform_indices = @transform_2, window_bounds = array<i64: 1, 8, 512>}, {pipeline_mode = #tpu.pipeline_mode<synchronous>, transform_indices = @transform_3, window_bounds = array<i64: 8, 8>}, {pipeline_mode = #tpu.pipeline_mode<synchronous>, transform_indices = @transform_4, window_bounds = array<i64: 8, 8>}, {pipeline_mode = #tpu.pipeline_mode<synchronous>, transform_indices = @transform_5, window_bounds = array<i64: 8, 1>}, {pipeline_mode = #tpu.pipeline_mode<synchronous>, transform_indices = @transform_6, window_bounds = array<i64: 8, 72>}, {pipeline_mode = #tpu.pipeline_mode<synchronous>, transform_indices = @transform_7, window_bounds = array<i64: 8, 1>}, {pipeline_mode = #tpu.pipeline_mode<synchronous>, transform_indices = @transform_8, window_bounds = array<i64: 9, 512>}, {transform_indices = @transform_9, window_bounds = array<i64: 1, 8, 512>}]} {
    %c0 = arith.constant 0 : index
    %c0_0 = arith.constant 0 : index
    %0 = vector.load %arg4[%c0, %c0_0] : memref<8x8xf32, #tpu.memory_space<vmem>>, vector<8x8xf32>
    %c0_1 = arith.constant 0 : index
    %c0_2 = arith.constant 0 : index
    %c0_3 = arith.constant 0 : index
    %1 = vector.load %arg2[%c0_1, %c0_2, %c0_3] : memref<1x8x512xf32, #tpu.memory_space<vmem>>, vector<1x8x512xf32>
    %2 = vector.shape_cast %1 : vector<1x8x512xf32> to vector<8x512xf32>
    %cst = arith.constant dense<0.000000e+00> : vector<8x512xf32>
    %3 = tpu.matmul %0, %2, %cst {dimension_numbers = #tpu.dot_dimension_numbers<[1], [0], [0], [1], [0, 0, 1, 1], [], []>} : vector<8x8xf32>, vector<8x512xf32>, vector<8x512xf32> -> vector<8x512xf32>
    %c0_4 = arith.constant 0 : index
    %c0_5 = arith.constant 0 : index
    %4 = vector.load %arg5[%c0_4, %c0_5] : memref<8x8xf32, #tpu.memory_space<vmem>>, vector<8x8xf32>
    %c0_6 = arith.constant 0 : index
    %c0_7 = arith.constant 0 : index
    %c0_8 = arith.constant 0 : index
    %5 = vector.load %arg3[%c0_6, %c0_7, %c0_8] : memref<1x8x512xf32, #tpu.memory_space<vmem>>, vector<1x8x512xf32>
    %6 = vector.shape_cast %5 : vector<1x8x512xf32> to vector<8x512xf32>
    %cst_9 = arith.constant dense<0.000000e+00> : vector<8x512xf32>
    %7 = tpu.matmul %4, %6, %cst_9 {dimension_numbers = #tpu.dot_dimension_numbers<[1], [0], [0], [1], [0, 0, 1, 1], [], []>} : vector<8x8xf32>, vector<8x512xf32>, vector<8x512xf32> -> vector<8x512xf32>
    %8 = arith.addf %3, %7 : vector<8x512xf32>
    %c0_10 = arith.constant 0 : index
    %c0_11 = arith.constant 0 : index
    %9 = vector.load %arg6[%c0_10, %c0_11] : memref<8x1xf32, #tpu.memory_space<vmem>>, vector<8x1xf32>
    %10 = vector.broadcast %9 : vector<8x1xf32> to vector<8x512xf32>
    %11 = arith.addf %8, %10 : vector<8x512xf32>
    %cst_12 = arith.constant 0.000000e+00 : f32
    %12 = vector.broadcast %cst_12 : f32 to vector<8x512xf32>
    %13 = arith.maximumf %11, %12 : vector<8x512xf32>
    %c0_13 = arith.constant 0 : index
    %c0_14 = arith.constant 0 : index
    %c0_15 = arith.constant 0 : index
    %14 = vector.load %arg1[%c0_13, %c0_14, %c0_15] : memref<1x8x2xf32, #tpu.memory_space<vmem>>, vector<1x8x2xf32>
    %15 = vector.shape_cast %14 : vector<1x8x2xf32> to vector<8x2xf32>
    %16 = vector.extract_strided_slice %13 {offsets = [0, 0], sizes = [8, 256], strides = [1, 1]} : vector<8x512xf32> to vector<8x256xf32>
    %17 = vector.extract_strided_slice %15 {offsets = [0, 0], sizes = [8, 1], strides = [1, 1]} : vector<8x2xf32> to vector<8x1xf32>
    %18 = vector.broadcast %17 : vector<8x1xf32> to vector<8x256xf32>
    %19 = arith.mulf %16, %18 : vector<8x256xf32>
    %20 = vector.extract_strided_slice %13 {offsets = [0, 256], sizes = [8, 256], strides = [1, 1]} : vector<8x512xf32> to vector<8x256xf32>
    %21 = vector.extract_strided_slice %15 {offsets = [0, 1], sizes = [8, 1], strides = [1, 1]} : vector<8x2xf32> to vector<8x1xf32>
    %22 = vector.broadcast %21 : vector<8x1xf32> to vector<8x256xf32>
    %23 = arith.mulf %20, %22 : vector<8x256xf32>
    %24 = tpu.concatenate %19, %23 in 1 : vector<8x256xf32>, vector<8x256xf32> -> vector<8x512xf32>
    %c0_16 = arith.constant 0 : index
    %c0_17 = arith.constant 0 : index
    %25 = vector.load %arg9[%c0_16, %c0_17] : memref<9x512xf32, #tpu.memory_space<vmem>>, vector<9x512xf32>
    %c17_i32 = arith.constant 17 : i32
    %26 = tpu.dynamic_rotate %24 by %c17_i32 dim 1 : vector<8x512xf32>, i32 -> vector<8x512xf32>
    %27 = vector.extract_strided_slice %25 {offsets = [0, 0], sizes = [1, 512], strides = [1, 1]} : vector<9x512xf32> to vector<1x512xf32>
    %28 = vector.broadcast %27 : vector<1x512xf32> to vector<8x512xf32>
    %29 = arith.mulf %26, %28 : vector<8x512xf32>
    %c0_18 = arith.constant 0 : index
    %c0_19 = arith.constant 0 : index
    %30 = vector.load %arg11[%c0_18, %c0_19] : memref<72x512xf32, #tpu.memory_space<vmem>>, vector<8x512xf32>
    tpu.vector_store %arg11[%c0_18, %c0_19], %29 {strides = array<i32>} : memref<72x512xf32, #tpu.memory_space<vmem>>, vector<8x512xf32>,
    %c16_i32 = arith.constant 16 : i32
    %31 = tpu.dynamic_rotate %24 by %c16_i32 dim 1 : vector<8x512xf32>, i32 -> vector<8x512xf32>
    %32 = vector.extract_strided_slice %25 {offsets = [1, 0], sizes = [1, 512], strides = [1, 1]} : vector<9x512xf32> to vector<1x512xf32>
    %33 = vector.broadcast %32 : vector<1x512xf32> to vector<8x512xf32>
    %34 = arith.mulf %31, %33 : vector<8x512xf32>
    %c8 = arith.constant 8 : index
    %c0_20 = arith.constant 0 : index
    %35 = vector.load %arg11[%c8, %c0_20] : memref<72x512xf32, #tpu.memory_space<vmem>>, vector<8x512xf32>
    tpu.vector_store %arg11[%c8, %c0_20], %34 {strides = array<i32>} : memref<72x512xf32, #tpu.memory_space<vmem>>, vector<8x512xf32>,
    %c15_i32 = arith.constant 15 : i32
    %36 = tpu.dynamic_rotate %24 by %c15_i32 dim 1 : vector<8x512xf32>, i32 -> vector<8x512xf32>
    %37 = vector.extract_strided_slice %25 {offsets = [2, 0], sizes = [1, 512], strides = [1, 1]} : vector<9x512xf32> to vector<1x512xf32>
    %38 = vector.broadcast %37 : vector<1x512xf32> to vector<8x512xf32>
    %39 = arith.mulf %36, %38 : vector<8x512xf32>
    %c16 = arith.constant 16 : index
    %c0_21 = arith.constant 0 : index
    %40 = vector.load %arg11[%c16, %c0_21] : memref<72x512xf32, #tpu.memory_space<vmem>>, vector<8x512xf32>
    tpu.vector_store %arg11[%c16, %c0_21], %39 {strides = array<i32>} : memref<72x512xf32, #tpu.memory_space<vmem>>, vector<8x512xf32>,
    %c1_i32 = arith.constant 1 : i32
    %41 = tpu.dynamic_rotate %24 by %c1_i32 dim 1 : vector<8x512xf32>, i32 -> vector<8x512xf32>
    %42 = vector.extract_strided_slice %25 {offsets = [3, 0], sizes = [1, 512], strides = [1, 1]} : vector<9x512xf32> to vector<1x512xf32>
    %43 = vector.broadcast %42 : vector<1x512xf32> to vector<8x512xf32>
    %44 = arith.mulf %41, %43 : vector<8x512xf32>
    %c24 = arith.constant 24 : index
    %c0_22 = arith.constant 0 : index
    %45 = vector.load %arg11[%c24, %c0_22] : memref<72x512xf32, #tpu.memory_space<vmem>>, vector<8x512xf32>
    tpu.vector_store %arg11[%c24, %c0_22], %44 {strides = array<i32>} : memref<72x512xf32, #tpu.memory_space<vmem>>, vector<8x512xf32>,
    %46 = vector.extract_strided_slice %25 {offsets = [4, 0], sizes = [1, 512], strides = [1, 1]} : vector<9x512xf32> to vector<1x512xf32>
    %47 = vector.broadcast %46 : vector<1x512xf32> to vector<8x512xf32>
    %48 = arith.mulf %24, %47 : vector<8x512xf32>
    %c32 = arith.constant 32 : index
    %c0_23 = arith.constant 0 : index
    %49 = vector.load %arg11[%c32, %c0_23] : memref<72x512xf32, #tpu.memory_space<vmem>>, vector<8x512xf32>
    tpu.vector_store %arg11[%c32, %c0_23], %48 {strides = array<i32>} : memref<72x512xf32, #tpu.memory_space<vmem>>, vector<8x512xf32>,
    %c511_i32 = arith.constant 511 : i32
    %50 = tpu.dynamic_rotate %24 by %c511_i32 dim 1 : vector<8x512xf32>, i32 -> vector<8x512xf32>
    %51 = vector.extract_strided_slice %25 {offsets = [5, 0], sizes = [1, 512], strides = [1, 1]} : vector<9x512xf32> to vector<1x512xf32>
    %52 = vector.broadcast %51 : vector<1x512xf32> to vector<8x512xf32>
    %53 = arith.mulf %50, %52 : vector<8x512xf32>
    %c40 = arith.constant 40 : index
    %c0_24 = arith.constant 0 : index
    %54 = vector.load %arg11[%c40, %c0_24] : memref<72x512xf32, #tpu.memory_space<vmem>>, vector<8x512xf32>
    tpu.vector_store %arg11[%c40, %c0_24], %53 {strides = array<i32>} : memref<72x512xf32, #tpu.memory_space<vmem>>, vector<8x512xf32>,
    %c497_i32 = arith.constant 497 : i32
    %55 = tpu.dynamic_rotate %24 by %c497_i32 dim 1 : vector<8x512xf32>, i32 -> vector<8x512xf32>
    %56 = vector.extract_strided_slice %25 {offsets = [6, 0], sizes = [1, 512], strides = [1, 1]} : vector<9x512xf32> to vector<1x512xf32>
    %57 = vector.broadcast %56 : vector<1x512xf32> to vector<8x512xf32>
    %58 = arith.mulf %55, %57 : vector<8x512xf32>
    %c48 = arith.constant 48 : index
    %c0_25 = arith.constant 0 : index
    %59 = vector.load %arg11[%c48, %c0_25] : memref<72x512xf32, #tpu.memory_space<vmem>>, vector<8x512xf32>
    tpu.vector_store %arg11[%c48, %c0_25], %58 {strides = array<i32>} : memref<72x512xf32, #tpu.memory_space<vmem>>, vector<8x512xf32>,
    %c496_i32 = arith.constant 496 : i32
    %60 = tpu.dynamic_rotate %24 by %c496_i32 dim 1 : vector<8x512xf32>, i32 -> vector<8x512xf32>
    %61 = vector.extract_strided_slice %25 {offsets = [7, 0], sizes = [1, 512], strides = [1, 1]} : vector<9x512xf32> to vector<1x512xf32>
    %62 = vector.broadcast %61 : vector<1x512xf32> to vector<8x512xf32>
    %63 = arith.mulf %60, %62 : vector<8x512xf32>
    %c56 = arith.constant 56 : index
    %c0_26 = arith.constant 0 : index
    %64 = vector.load %arg11[%c56, %c0_26] : memref<72x512xf32, #tpu.memory_space<vmem>>, vector<8x512xf32>
    tpu.vector_store %arg11[%c56, %c0_26], %63 {strides = array<i32>} : memref<72x512xf32, #tpu.memory_space<vmem>>, vector<8x512xf32>,
    %c495_i32 = arith.constant 495 : i32
    %65 = tpu.dynamic_rotate %24 by %c495_i32 dim 1 : vector<8x512xf32>, i32 -> vector<8x512xf32>
    %66 = vector.extract_strided_slice %25 {offsets = [8, 0], sizes = [1, 512], strides = [1, 1]} : vector<9x512xf32> to vector<1x512xf32>
    %67 = vector.broadcast %66 : vector<1x512xf32> to vector<8x512xf32>
    %68 = arith.mulf %65, %67 : vector<8x512xf32>
    %c64 = arith.constant 64 : index
    %c0_27 = arith.constant 0 : index
    %69 = vector.load %arg11[%c64, %c0_27] : memref<72x512xf32, #tpu.memory_space<vmem>>, vector<8x512xf32>
    tpu.vector_store %arg11[%c64, %c0_27], %68 {strides = array<i32>} : memref<72x512xf32, #tpu.memory_space<vmem>>, vector<8x512xf32>,
    %c0_28 = arith.constant 0 : index
    %c0_29 = arith.constant 0 : index
    %70 = vector.load %arg7[%c0_28, %c0_29] : memref<8x72xf32, #tpu.memory_space<vmem>>, vector<8x72xf32>
    %c0_30 = arith.constant 0 : index
    %c0_31 = arith.constant 0 : index
    %71 = vector.load %arg11[%c0_30, %c0_31] : memref<72x512xf32, #tpu.memory_space<vmem>>, vector<72x512xf32>
    %cst_32 = arith.constant dense<0.000000e+00> : vector<8x512xf32>
    %72 = tpu.matmul %70, %71, %cst_32 {dimension_numbers = #tpu.dot_dimension_numbers<[1], [0], [0], [1], [0, 0, 1, 1], [], []>} : vector<8x72xf32>, vector<72x512xf32>, vector<8x512xf32> -> vector<8x512xf32>
    %c0_33 = arith.constant 0 : index
    %c0_34 = arith.constant 0 : index
    %73 = vector.load %arg8[%c0_33, %c0_34] : memref<8x1xf32, #tpu.memory_space<vmem>>, vector<8x1xf32>
    %74 = vector.broadcast %73 : vector<8x1xf32> to vector<8x512xf32>
    %75 = arith.addf %72, %74 : vector<8x512xf32>
    %cst_35 = arith.constant 0.000000e+00 : f32
    %76 = vector.broadcast %cst_35 : f32 to vector<8x512xf32>
    %77 = arith.maximumf %75, %76 : vector<8x512xf32>
    %c0_36 = arith.constant 0 : index
    %c0_37 = arith.constant 0 : index
    %c0_38 = arith.constant 0 : index
    %78 = vector.load %arg10[%c0_36, %c0_37, %c0_38] : memref<1x8x512xf32, #tpu.memory_space<vmem>>, vector<1x8x512xf32>
    %79 = vector.shape_cast %78 : vector<1x8x512xf32> to vector<8x512xf32>
    %80 = vector.shape_cast %77 : vector<8x512xf32> to vector<1x8x512xf32>
    tpu.vector_store %arg10[%c0_36, %c0_37, %c0_38], %80 {strides = array<i32>} : memref<1x8x512xf32, #tpu.memory_space<vmem>>, vector<1x8x512xf32>,
    return
  }
  func.func @transform_0(%arg0: i32) -> (i32, i32, i32) {
    %c0_i32 = arith.constant 0 : i32
    %c0_i32_0 = arith.constant 0 : i32
    %c0_i32_1 = arith.constant 0 : i32
    return %arg0, %c0_i32, %c0_i32_0 : i32, i32, i32
  }
  func.func @transform_1(%arg0: i32) -> (i32, i32, i32) {
    %c0_i32 = arith.constant 0 : i32
    %c0_i32_0 = arith.constant 0 : i32
    %c0_i32_1 = arith.constant 0 : i32
    return %arg0, %c0_i32, %c0_i32_0 : i32, i32, i32
  }
  func.func @transform_2(%arg0: i32) -> (i32, i32, i32) {
    %c0_i32 = arith.constant 0 : i32
    %c0_i32_0 = arith.constant 0 : i32
    %c0_i32_1 = arith.constant 0 : i32
    return %arg0, %c0_i32, %c0_i32_0 : i32, i32, i32
  }
  func.func @transform_3(%arg0: i32) -> (i32, i32) {
    %c0_i32 = arith.constant 0 : i32
    %c0_i32_0 = arith.constant 0 : i32
    %c0_i32_1 = arith.constant 0 : i32
    return %c0_i32, %c0_i32_0 : i32, i32
  }
  func.func @transform_4(%arg0: i32) -> (i32, i32) {
    %c0_i32 = arith.constant 0 : i32
    %c0_i32_0 = arith.constant 0 : i32
    %c0_i32_1 = arith.constant 0 : i32
    return %c0_i32, %c0_i32_0 : i32, i32
  }
  func.func @transform_5(%arg0: i32) -> (i32, i32) {
    %c0_i32 = arith.constant 0 : i32
    %c0_i32_0 = arith.constant 0 : i32
    %c0_i32_1 = arith.constant 0 : i32
    return %c0_i32, %c0_i32_0 : i32, i32
  }
  func.func @transform_6(%arg0: i32) -> (i32, i32) {
    %c0_i32 = arith.constant 0 : i32
    %c0_i32_0 = arith.constant 0 : i32
    %c0_i32_1 = arith.constant 0 : i32
    return %c0_i32, %c0_i32_0 : i32, i32
  }
  func.func @transform_7(%arg0: i32) -> (i32, i32) {
    %c0_i32 = arith.constant 0 : i32
    %c0_i32_0 = arith.constant 0 : i32
    %c0_i32_1 = arith.constant 0 : i32
    return %c0_i32, %c0_i32_0 : i32, i32
  }
  func.func @transform_8(%arg0: i32) -> (i32, i32) {
    %c0_i32 = arith.constant 0 : i32
    %c0_i32_0 = arith.constant 0 : i32
    %c0_i32_1 = arith.constant 0 : i32
    return %c0_i32, %c0_i32_0 : i32, i32
  }
  func.func @transform_9(%arg0: i32) -> (i32, i32, i32) {
    %c0_i32 = arith.constant 0 : i32
    %c0_i32_0 = arith.constant 0 : i32
    %c0_i32_1 = arith.constant 0 : i32
    return %arg0, %c0_i32, %c0_i32_0 : i32, i32, i32
  }
}

</mosaic_0001>

<bundles_post_ra>
// kernel: tpu_custom_call.1
= control target key start
LH: loop header
LB: loop body
LE: loop exit
PB: predicated region body
PF: predicated region fallthrough
CT: control target
= control target key end

     0   :  { %14 = vsyncpa [#allocation4], 0  ;;  %s1416_s0 = inlined_call_operand.vmem [shape: f32[1,8,2], index: 0, kind: input, shape index: {}]   ;;  %s1417_s1 = inlined_call_operand.hbm [shape: f32[1,8,512], index: 1, kind: input, shape index: {}]   ;;  %s1418_s2 = inlined_call_operand.vmem [shape: f32[1,8,512], index: 2, kind: input, shape index: {}]   ;;  %s1419_s3 = inlined_call_operand.hbm [shape: f32[8,8], index: 3, kind: input, shape index: {}]   ;;  %s1420_s4 = inlined_call_operand.vmem [shape: f32[8,8], index: 4, kind: input, shape index: {}]   ;;  %s1421_s5 = inlined_call_operand.vmem [shape: f32[8,1], index: 5, kind: input, shape index: {}]   ;;  %s1422_s6 = inlined_call_operand.vmem [shape: f32[8,72], index: 6, kind: input, shape index: {}]   ;;  %s1423_s7 = inlined_call_operand.vmem [shape: f32[8,1], index: 7, kind: input, shape index: {}]   ;;  %s1424_s8 = inlined_call_operand.hbm [shape: f32[9,512], index: 8, kind: input, shape index: {}]   ;;  %s1425_s9 = inlined_call_operand.hbm [shape: f32[1,8,512], index: 9, kind: output, shape index: {}]  }
   0x1   :  { %15 = vsyncpa [#allocation7], 0 }
   0x2   :  { %16 = vsyncpa [#allocation5], 0  ;;  %s1102_s30 = smov [#allocation6]   ;;  %s1103_s11 = smov [#allocation3]  }
   0x3   :  { %s37_s10 = sshll.u32 %s1102_s30, 4  ;;  %s25_s12 = sshll.u32 %s1103_s11, 4  ;;  %s38_s10 = int_to_ptr.vmem [resolvable:$true] %s37_s10  ;;  %s26_s12 = int_to_ptr.vmem [resolvable:$true] %s25_s12 }
   0x4   :  { %s1008_s15 = scalar_lea.hbm %s1419_s3, 128 }
   0x5   :  { %p1009_p0 = scmp.ne.s32.totalorder %s1419_s3, %s1008_s15  ;;  %p1012_p1 = scmp.lt.u32.totalorder %s1008_s15, %s1419_s3 }
   0x7   :  { %p1014_p2 = pnand %p1012_p1, %p1009_p0 }
   0x9   :  { %1017 = shalt.err (!%p1014_p2)
}
   0xa   :  { %s1018_s20 = scalar_lea.vmem %s38_s10, 128  ;;  %p1023_p4 = scmp.lt.s32.totalorder %s38_s10, %s38_s10 }
   0xb   :  { %p1019_p3 = scmp.ne.s32.totalorder %s38_s10, %s1018_s20  ;;  %p1024_p5 = scmp.lt.s32.totalorder %s1018_s20, %s1018_s20 }
   0xd   :  { %p1025_p6 = por %p1024_p5, %p1023_p4 }
   0xf   :  { %p1026_p7 = pnand %p1025_p6, %p1019_p3 }
  0x11   :  { %1029 = shalt.err (!%p1026_p7)
}
  0x12   :  { %40 = dma.hbm_to_vmem [thread:$0]  %s1419_s3, 128, %s38_s10, [#allocation7]  }
  0x13   :  { %s1030_s25 = scalar_lea.hbm %s1417_s1, 512 }
  0x14   :  { %p1031_p8 = scmp.ne.s32.totalorder %s1417_s1, %s1030_s25  ;;  %p1034_p9 = scmp.lt.u32.totalorder %s1030_s25, %s1417_s1 }
  0x16   :  { %p1036_p10 = pnand %p1034_p9, %p1031_p8 }
  0x18   :  { %1039 = shalt.err (!%p1036_p10)
}
  0x19   :  { %s1040_s30 = scalar_lea.vmem %s26_s12, 512  ;;  %p1045_p12 = scmp.lt.s32.totalorder %s26_s12, %s26_s12 }
  0x1a   :  { %p1041_p11 = scmp.ne.s32.totalorder %s26_s12, %s1040_s30  ;;  %p1046_p13 = scmp.lt.s32.totalorder %s1040_s30, %s1040_s30 }
  0x1c   :  { %p1047_p0 = por %p1046_p13, %p1045_p12 }
  0x1e   :  { %p1048_p1 = pnand %p1047_p0, %p1041_p11 }
  0x20   :  { %1051 = shalt.err (!%p1048_p1)
}
  0x21   :  { %28 = dma.hbm_to_vmem [thread:$0]  %s1417_s1, 512, %s26_s12, [#allocation4]  }
  0x22   :  { %s1104_s11 = smov [#allocation8]   ;;  %s1052_s16 = scalar_lea.hbm %s1424_s8, 1024 }
  0x23   :  { %s54_s13 = sshll.u32 %s1104_s11, 4  ;;  %p1053_p2 = scmp.ne.s32.totalorder %s1424_s8, %s1052_s16  ;;  %s55_s13 = int_to_ptr.vmem [resolvable:$true] %s54_s13 }
  0x24   :  { %p1056_p3 = scmp.lt.u32.totalorder %s1052_s16, %s1424_s8 }
  0x26   :  { %p1058_p4 = pnand %p1056_p3, %p1053_p2 }
  0x28   :  { %1061 = shalt.err (!%p1058_p4)
}
  0x29   :  { %s1062_s21 = scalar_lea.vmem %s55_s13, 1024  ;;  %p1067_p6 = scmp.lt.s32.totalorder %s55_s13, %s55_s13 }
  0x2a   :  { %p1063_p5 = scmp.ne.s32.totalorder %s55_s13, %s1062_s21  ;;  %p1068_p7 = scmp.lt.s32.totalorder %s1062_s21, %s1062_s21 }
  0x2c   :  { %p1069_p8 = por %p1068_p7, %p1067_p6 }
  0x2e   :  { %p1070_p9 = pnand %p1069_p8, %p1063_p5 }
  0x30   :  { %1073 = shalt.err (!%p1070_p9)
}
  0x31   :  { %s1105_s1 = smov 512   ;;  %s1106_s12 = smov 32  }
  0x32   :  { %60 = dma.hbm_to_vmem [thread:$0]  %s1424_s8, 1024, %s55_s13, [#allocation7], %s1105_s1, %s1105_s1, %s1106_s12  }
  0x33   :  { %1096 = dma.done.wait [#allocation4], 512  }
  0x34   :  { %1097 = vsyncadd [#allocation4], 4294966784 }
  0x35   :  { %1098 = dma.done.wait [#allocation7], 1152  }
  0x36   :  { %1099 = vsyncadd [#allocation7], 4294966144  ;;  %v1107_v0 = vmov 0.0   ;;  %v1108_v1 = vmov 0   ;;  %v1109_v2 = vmov 1   ;;  %v77_v3 = vld [vmem:[%s1418_s2 + $0x8] sm:$0xff]  ;;  %v415_v35 = vlaneseq }
  0x37   :  { %148 = vmatprep.mubr.f32.mxu0 %v1107_v0  ;;  %219 = vmatprep.mubr.f32.mxu1 %v1107_v0  ;;  %v79_v4 = vld [vmem:[%s1418_s2 + $0x18] sm:$0xff]  ;;  %v76_v5 = vld [vmem:[%s1418_s2] sm:$0xff]  ;;  %vm80_vm0 = vcmask 64512   ;;  %v78_v6 = vld [vmem:[%s1418_s2 + $0x10] sm:$0xff]  ;;  %s1112_s14 = smov 15   ;;  %s1113_s15 = smov 1  }
  0x38   :  { %1005 = vset.pattern.permute.xlu0 %v1108_v1  ;;  %1006 = vset.pattern.permute.xlu1 %v1109_v2  ;;  %v75_v7 = vld [vmem:[%s1420_s4] sm:$0xff]  ;;  %v71_v9 = vld [vmem:[#allocation3] sm:$0xff]  ;;  %v74_v10 = vld [vmem:[#allocation3 + $0x18] sm:$0xff]  ;;  %s1114_s16 = smov 127   ;;  %s1115_s17 = smov 113   ;;  %v1273_v37 = vand.u32 127, %v415_v35 }
  0x39   :  { %84 = vmatprep.subr.mxu0 %v77_v3  ;;  %155 = vmatprep.subr.mxu1 %v79_v4  ;;  %v72_v8 = vld [vmem:[#allocation3 + $0x8] sm:$0xff]  ;;  %v73_v11 = vld [vmem:[#allocation3 + $0x10] sm:$0xff]  ;;  %v70_v14 = vld [vmem:[#allocation6] sm:$0xff]  ;;  %s1116_s18 = smov 112   ;;  %s1117_s19 = smov 111   ;;  %v1275_v38 = vshrl.u32 %v415_v35, 7 }
  0x3a   :  { %85 = vmatpush1.msra.mxu0 %v76_v5  ;;  %156 = vmatpush1.msra.mxu1 %v78_v6  ;;  %v371_v12 = vld [vmem:[%s1421_s5] sm:$0xff]  ;;  %s1111_s5 = smov 16   ;;  %vm417_vm1 = vcmp.lt.s32.totalorder %v1273_v37, 17  ;;  %v1280_v44 = vld [vmem:[#allocation8 + $0x8] sm:$0xff]  ;;  %vm454_vm2 = vcmp.lt.s32.totalorder %v1273_v37, 16  ;;  %v1287_v49 = vld [vmem:[#allocation8 + $0x10] sm:$0xff] }
  0x3b   :  { %942 = vmatmul.mubr.msk.f32.vlgmr.msra.gmra.mrb[0].mxu0 %vm80_vm0, %v75_v7  ;;  %943 = vmatmul.mubr.msk.f32.vlgmr.msra.gmra.mrb[0].mxu1 %vm80_vm0, %v75_v7  ;;  %v385_v13 = vld [vmem:[%s1416_s0] sm:$0xff]  ;;  %s1110_s0 = smov 17   ;;  %v424_v40 = vsub.s32 0, %v1275_v38  ;;  %v461_v41 = vsub.s32 1, %v1275_v38  ;;  %v1291_v51 = vld [vmem:[#allocation8 + $0x18] sm:$0xff]  ;;  %vm491_vm3 = vcmp.lt.s32.totalorder %v1273_v37, 15 }
  0x3c   :  { %229 = vmatprep.subr.mxu0 %v72_v8  ;;  %300 = vmatprep.subr.mxu1 %v74_v10  ;;  %v766_v34 = vld [vmem:[%s1423_s7] sm:$0xff]  ;;  %vm528_vm4 = vcmp.lt.s32.totalorder %v1273_v37, 1  ;;  %vm589_vm5 = vcmp.lt.s32.totalorder %v1273_v37, 127  ;;  %vm626_vm6 = vcmp.lt.s32.totalorder %v1273_v37, 113  ;;  %vm663_vm7 = vcmp.lt.s32.totalorder %v1273_v37, 112  ;;  %s1118_s12 = smov [#allocation9]  }
  0x3d   :  { %230 = vmatpush1.msra.mxu0 %v71_v9  ;;  %301 = vmatpush1.msra.mxu1 %v73_v11  ;;  %v429_v45 = vrot.slane %v1280_v44, %v424_v40  ;;  %v466_v46 = vrot.slane %v1280_v44, %v461_v41  ;;  %v1289_v50 = vld [vmem:[#allocation8] sm:$0xff]  ;;  %v437_v54 = vrot.slane %v1291_v51, %v424_v40  ;;  %vm700_vm8 = vcmp.lt.s32.totalorder %v1273_v37, 111  ;;  %s932_s22 = sshll.u32 %s1118_s12, 4  ;;  %s933_s22 = int_to_ptr.vmem [resolvable:$true] %s932_s22 }
  0x3e   :  { %293 = vmatprep.mubr.f32.mxu0 %v1107_v0  ;;  %364 = vmatprep.mubr.f32.mxu1 %v1107_v0  ;;  %v425_v53 = vrot.slane %v1289_v50, %v424_v40  ;;  %v470_v56 = vrot.slane %v1287_v49, %v461_v41  ;;  %v462_v59 = vrot.slane %v1289_v50, %v461_v41  ;;  %vm772_vm9 = vcmask 588800   ;;  %p1079_p11 = scmp.lt.s32.totalorder %s933_s22, %s933_s22 }
  0x3f   :  { %374 = vperm.xlu0 %1005, %v371_v12   ;;  %394 = vperm.xlu1 %1006, %v385_v13   ;;  %v474_v60 = vrot.slane %v1291_v51, %v461_v41  ;;  %v433_v61 = vrot.slane %v1287_v49, %v424_v40 }
  0x43   :  { %944 = vmatmul.mubr.msk.f32.vlgmr.msra.gmra.mrb[0].mxu0 %vm80_vm0, %v70_v14  ;;  %945 = vmatmul.mubr.msk.f32.vlgmr.msra.gmra.mrb[0].mxu1 %vm80_vm0, %v70_v14 }
  0x44   :  { %388 = vperm.xlu0 %1005, %v385_v13   ;;  %840 = vmatprep.mubr.f32.mxu0 %v1107_v0 }
  0x45   :  { %911 = vmatprep.mubr.f32.mxu1 %v1107_v0  ;;  %1007 = vset.pattern.permute.xlu1 %v1108_v1 }
  0xbe   :  { %v375_v15 = vpop.permute.xlu0 %374  ;;  %v395_v31 = vpop.permute.xlu1 %394 }
  0xc3   :  { %v389_v26 = vpop.permute.xlu0 %388 }
 0x116   :  { %v295_v16 = vpop.f32.mrb[0].mxu0  ;;  %v366_v17 = vpop.f32.mrb[0].mxu1 }
 0x117   :  { %v377_v18 = vadd.f32 %v375_v15, %v295_v16  ;;  %v379_v19 = vadd.f32 %v375_v15, %v366_v17  ;;  %v297_v20 = vpop.f32.mrb[1].mxu0  ;;  %v368_v21 = vpop.f32.mrb[1].mxu1 }
 0x118   :  { %v378_v22 = vadd.f32 %v375_v15, %v297_v20  ;;  %v380_v23 = vadd.f32 %v375_v15, %v368_v21 }
 0x119   :  { %v381_v24 = vmax.f32 %v377_v18, 0.0  ;;  %v383_v27 = vmax.f32 %v379_v19, 0.0  ;;  %v498_v18 = vsub.s32 2, %v1275_v38  ;;  %v535_v19 = vsub.s32 3, %v1275_v38 }
 0x11a   :  { %v382_v25 = vmax.f32 %v378_v22, 0.0  ;;  %v384_v29 = vmax.f32 %v380_v23, 0.0 }
 0x11b   :  { %v1230_v28 = vmul.f32 %v389_v26, %v381_v24  ;;  %v1236_v32 = vmul.f32 %v395_v31, %v383_v27  ;;  %v503_v22 = vrot.slane %v1280_v44, %v498_v18  ;;  %v540_v23 = vrot.slane %v1280_v44, %v535_v19 }
 0x11c   :  { %v1232_v30 = vmul.f32 %v389_v26, %v382_v25  ;;  %v1238_v33 = vmul.f32 %v395_v31, %v384_v29  ;;  %v499_v27 = vrot.slane %v1289_v50, %v498_v18  ;;  %v511_v29 = vrot.slane %v1291_v51, %v498_v18 }
 0x11d   :  { %407 = vrot.lane.b32.xlu1 %v1230_v28, %s1110_s0  ;;  %v548_v40 = vrot.slane %v1291_v51, %v535_v19  ;;  %v507_v41 = vrot.slane %v1287_v49, %v498_v18 }
 0x11e   :  { %409 = vrot.lane.b32.xlu0 %v1232_v30, %s1110_s0 }
 0x121   :  { %411 = vrot.lane.b32.xlu1 %v1236_v32, %s1110_s0 }
 0x122   :  { %413 = vrot.lane.b32.xlu0 %v1238_v33, %s1110_s0 }
 0x125   :  { %446 = vrot.lane.b32.xlu1 %v1230_v28, %s1111_s5 }
 0x126   :  { %448 = vrot.lane.b32.xlu0 %v1232_v30, %s1111_s5 }
 0x129   :  { %450 = vrot.lane.b32.xlu1 %v1236_v32, %s1111_s5 }
 0x12a   :  { %452 = vrot.lane.b32.xlu0 %v1238_v33, %s1111_s5 }
 0x12d   :  { %483 = vrot.lane.b32.xlu1 %v1230_v28, %s1112_s14 }
 0x12e   :  { %485 = vrot.lane.b32.xlu0 %v1232_v30, %s1112_s14 }
 0x131   :  { %487 = vrot.lane.b32.xlu1 %v1236_v32, %s1112_s14 }
 0x132   :  { %489 = vrot.lane.b32.xlu0 %v1238_v33, %s1112_s14 }
 0x135   :  { %520 = vrot.lane.b32.xlu1 %v1230_v28, %s1113_s15 }
 0x136   :  { %522 = vrot.lane.b32.xlu0 %v1232_v30, %s1113_s15 }
 0x139   :  { %524 = vrot.lane.b32.xlu1 %v1236_v32, %s1113_s15 }
 0x13a   :  { %526 = vrot.lane.b32.xlu0 %v1238_v33, %s1113_s15 }
 0x13d   :  { %581 = vrot.lane.b32.xlu1 %v1230_v28, %s1114_s16 }
 0x13e   :  { %583 = vrot.lane.b32.xlu0 %v1232_v30, %s1114_s16 }
 0x141   :  { %585 = vrot.lane.b32.xlu1 %v1236_v32, %s1114_s16 }
 0x142   :  { %587 = vrot.lane.b32.xlu0 %v1238_v33, %s1114_s16 }
 0x145   :  { %618 = vrot.lane.b32.xlu1 %v1230_v28, %s1115_s17 }
 0x146   :  { %620 = vrot.lane.b32.xlu0 %v1232_v30, %s1115_s17 }
 0x149   :  { %622 = vrot.lane.b32.xlu1 %v1236_v32, %s1115_s17 }
 0x14a   :  { %624 = vrot.lane.b32.xlu0 %v1238_v33, %s1115_s17 }
 0x14d   :  { %655 = vrot.lane.b32.xlu1 %v1230_v28, %s1116_s18 }
 0x14e   :  { %657 = vrot.lane.b32.xlu0 %v1232_v30, %s1116_s18 }
 0x151   :  { %659 = vrot.lane.b32.xlu1 %v1236_v32, %s1116_s18 }
 0x152   :  { %661 = vrot.lane.b32.xlu0 %v1238_v33, %s1116_s18 }
 0x155   :  { %692 = vrot.lane.b32.xlu1 %v1230_v28, %s1117_s19 }
 0x156   :  { %694 = vrot.lane.b32.xlu0 %v1232_v30, %s1117_s19 }
 0x159   :  { %696 = vrot.lane.b32.xlu1 %v1236_v32, %s1117_s19 }
 0x15a   :  { %698 = vrot.lane.b32.xlu0 %v1238_v33, %s1117_s19 }
 0x15d   :  { %769 = vperm.xlu1 %1007, %v766_v34   ;;  %v544_v34 = vrot.slane %v1287_v49, %v535_v19 }
 0x18f   :  { %v408_v36 = vpop.permute.xlu1 %407 }
 0x190   :  { %v410_v39 = vpop.permute.xlu0 %409 }
 0x191   :  { %v420_v47 = vsel %vm417_vm1, %v408_v36, %v410_v39 }
 0x192   :  { %v439_v57 = vmul.f32 %v429_v45, %v420_v47 }
 0x193   :  { %v412_v42 = vpop.permute.xlu1 %411 }
 0x194   :  { %v414_v43 = vpop.permute.xlu0 %413  ;;  %v419_v1 = vsel %vm417_vm1, %v410_v39, %v412_v42  ;;  %v536_v39 = vrot.slane %v1289_v50, %v535_v19 }
 0x195   :  { %v418_v62 = vsel %vm417_vm1, %v412_v42, %v414_v43  ;;  %v421_v63 = vsel %vm417_vm1, %v414_v43, %v408_v36  ;;  %v440_v12 = vmul.f32 %v433_v61, %v419_v1 }
 0x196   :  { %v438_v8 = vmul.f32 %v425_v53, %v421_v63  ;;  %v441_v9 = vmul.f32 %v437_v54, %v418_v62  ;;  %v596_v54 = vsub.s32 5, %v1275_v38 }
 0x197   :  { %v447_v48 = vpop.permute.xlu1 %446 }
 0x198   :  { %v449_v52 = vpop.permute.xlu0 %448 }
 0x199   :  { %v457_v55 = vsel %vm454_vm2, %v447_v48, %v449_v52 }
 0x19a   :  { %v476_v58 = vmul.f32 %v466_v46, %v457_v55  ;;  %v559_v46 = vsub.s32 4, %v1275_v38 }
 0x19b   :  { %v451_v0 = vpop.permute.xlu1 %450 }
 0x19c   :  { %v456_v2 = vsel %vm454_vm2, %v449_v52, %v451_v0  ;;  %v453_v3 = vpop.permute.xlu0 %452  ;;  %v952_v4 = vpack.c.bf16 %v476_v58, %v439_v57 }
 0x19d   :  { %v477_v5 = vmul.f32 %v470_v56, %v456_v2  ;;  %v455_v6 = vsel %vm454_vm2, %v451_v0, %v453_v3  ;;  %v458_v7 = vsel %vm454_vm2, %v453_v3, %v447_v48  ;;  %v560_v0 = vrot.slane %v1289_v50, %v559_v46 }
 0x19e   :  { %v475_v10 = vmul.f32 %v462_v59, %v458_v7  ;;  %v478_v11 = vmul.f32 %v474_v60, %v455_v6  ;;  %953 = vmatprep.subr.bf16.mxu0 %v952_v4  ;;  %v597_v2 = vrot.slane %v1289_v50, %v596_v54 }
 0x19f   :  { %v484_v13 = vpop.permute.xlu1 %483  ;;  %v970_v17 = vpack.c.bf16 %v477_v5, %v440_v12  ;;  %v568_v5 = vrot.slane %v1287_v49, %v559_v46  ;;  %v572_v12 = vrot.slane %v1291_v51, %v559_v46 }
 0x1a0   :  { %v954_v14 = vpack.c.bf16 %v475_v10, %v438_v8  ;;  %v486_v15 = vpop.permute.xlu0 %485  ;;  %v968_v16 = vpack.c.bf16 %v478_v11, %v441_v9  ;;  %v601_v8 = vrot.slane %v1280_v44, %v596_v54  ;;  %v564_v9 = vrot.slane %v1280_v44, %v559_v46 }
 0x1a1   :  { %v494_v24 = vsel %vm491_vm3, %v484_v13, %v486_v15  ;;  %v605_v10 = vrot.slane %v1287_v49, %v596_v54  ;;  %v609_v11 = vrot.slane %v1291_v51, %v596_v54 }
 0x1a2   :  { %955 = vmatpush1.bf16.msra.mxu0 %v954_v14  ;;  %969 = vmatprep.subr.bf16.mxu1 %v968_v16  ;;  %v513_v35 = vmul.f32 %v503_v22, %v494_v24  ;;  %v573_v14 = vmul.f32 %v560_v0, %v1230_v28  ;;  %v575_v22 = vmul.f32 %v568_v5, %v1236_v32  ;;  %v670_v32 = vsub.s32 7, %v1275_v38 }
 0x1a3   :  { %v488_v20 = vpop.permute.xlu1 %487  ;;  %971 = vmatpush1.bf16.msra.mxu1 %v970_v17  ;;  %v576_v28 = vmul.f32 %v572_v12, %v1238_v33  ;;  %v949_v12 = vld [vmem:[#allocation8 + $0x38] ss:$0 sm:$0xff] }
 0x1a4   :  { %v490_v21 = vpop.permute.xlu0 %489  ;;  %v493_v47 = vsel %vm491_vm3, %v486_v15, %v488_v20  ;;  %v675_v46 = vrot.slane %v1280_v44, %v670_v32 }
 0x1a5   :  { %v492_v42 = vsel %vm491_vm3, %v488_v20, %v490_v21  ;;  %v495_v43 = vsel %vm491_vm3, %v490_v21, %v484_v13  ;;  %v514_v62 = vmul.f32 %v507_v41, %v493_v47  ;;  %v574_v21 = vmul.f32 %v564_v9, %v1232_v30 }
 0x1a6   :  { %v512_v58 = vmul.f32 %v499_v27, %v495_v43  ;;  %v515_v59 = vmul.f32 %v511_v29, %v492_v42  ;;  %v671_v41 = vrot.slane %v1289_v50, %v670_v32 }
 0x1a7   :  { %v521_v25 = vpop.permute.xlu1 %520 }
 0x1a8   :  { %v523_v26 = vpop.permute.xlu0 %522 }
 0x1a9   :  { %v531_v31 = vsel %vm528_vm4, %v521_v25, %v523_v26 }
 0x1aa   :  { %v550_v36 = vmul.f32 %v540_v23, %v531_v31 }
 0x1ab   :  { %v525_v45 = vpop.permute.xlu1 %524 }
 0x1ac   :  { %v530_v48 = vsel %vm528_vm4, %v523_v26, %v525_v45  ;;  %v527_v52 = vpop.permute.xlu0 %526  ;;  %v956_v53 = vpack.c.bf16 %v550_v36, %v513_v35  ;;  %v633_v36 = vsub.s32 6, %v1275_v38 }
 0x1ad   :  { %v551_v55 = vmul.f32 %v544_v34, %v530_v48  ;;  %v529_v56 = vsel %vm528_vm4, %v525_v45, %v527_v52  ;;  %v532_v57 = vsel %vm528_vm4, %v527_v52, %v521_v25  ;;  %v679_v52 = vrot.slane %v1287_v49, %v670_v32 }
 0x1ae   :  { %v549_v60 = vmul.f32 %v536_v39, %v532_v57  ;;  %v552_v61 = vmul.f32 %v548_v40, %v529_v56  ;;  %957 = vmatprep.subr.bf16.mxu0 %v956_v53  ;;  %v634_v39 = vrot.slane %v1289_v50, %v633_v36  ;;  %v638_v40 = vrot.slane %v1280_v44, %v633_v36 }
 0x1af   :  { %v582_v63 = vpop.permute.xlu1 %581  ;;  %v974_v6 = vpack.c.bf16 %v551_v55, %v514_v62  ;;  %v642_v45 = vrot.slane %v1287_v49, %v633_v36  ;;  %v646_v48 = vrot.slane %v1291_v51, %v633_v36  ;;  %v683_v50 = vrot.slane %v1291_v51, %v670_v32 }
 0x1b0   :  { %v958_v1 = vpack.c.bf16 %v549_v60, %v512_v58  ;;  %v584_v3 = vpop.permute.xlu0 %583  ;;  %v972_v4 = vpack.c.bf16 %v552_v61, %v515_v59 }
 0x1b1   :  { %v592_v7 = vsel %vm589_vm5, %v582_v63, %v584_v3 }
 0x1b2   :  { %959 = vmatpush1.bf16.msra.mxu0 %v958_v1  ;;  %973 = vmatprep.subr.bf16.mxu1 %v972_v4  ;;  %v610_v15 = vmul.f32 %v597_v2, %v592_v7  ;;  %v947_v7 = vld [vmem:[#allocation8 + $0x28] ss:$0 sm:$0xff] }
 0x1b3   :  { %v586_v13 = vpop.permute.xlu1 %585  ;;  %975 = vmatpush1.bf16.msra.mxu1 %v974_v6 }
 0x1b4   :  { %v591_v16 = vsel %vm589_vm5, %v584_v3, %v586_v13  ;;  %v588_v17 = vpop.permute.xlu0 %587  ;;  %v962_v27 = vpack.c.bf16 %v610_v15, %v573_v14 }
 0x1b5   :  { %v611_v18 = vmul.f32 %v601_v8, %v591_v16  ;;  %v590_v19 = vsel %vm589_vm5, %v586_v13, %v588_v17  ;;  %v593_v20 = vsel %vm589_vm5, %v588_v17, %v582_v63  ;;  %v946_v8 = vld [vmem:[#allocation8 + $0x20] ss:$0 sm:$0xff] }
 0x1b6   :  { %v612_v23 = vmul.f32 %v605_v10, %v590_v19  ;;  %v613_v24 = vmul.f32 %v609_v11, %v593_v20  ;;  %v948_v11 = vld [vmem:[#allocation8 + $0x30] ss:$0 sm:$0xff] }
 0x1b7   :  { %v619_v25 = vpop.permute.xlu1 %618  ;;  %v960_v26 = vpack.c.bf16 %v611_v18, %v574_v21  ;;  %v729_v21 = vld [vmem:[%s1422_s6] sm:$0xff]  ;;  %s1074_s6 = scalar_lea.vmem %s933_s22, 512 }
 0x1b8   :  { %v978_v29 = vpack.c.bf16 %v612_v23, %v575_v22  ;;  %v621_v31 = vpop.permute.xlu0 %620  ;;  %v976_v34 = vpack.c.bf16 %v613_v24, %v576_v28  ;;  %p1075_p10 = scmp.ne.s32.totalorder %s933_s22, %s1074_s6  ;;  %p1080_p12 = scmp.lt.s32.totalorder %s1074_s6, %s1074_s6 }
 0x1b9   :  { %961 = vmatprep.subr.bf16.mxu0 %v960_v26  ;;  %v629_v43 = vsel %vm626_vm6, %v619_v25, %v621_v31 }
 0x1ba   :  { %963 = vmatpush1.bf16.msra.mxu0 %v962_v27  ;;  %977 = vmatprep.subr.bf16.mxu1 %v976_v34  ;;  %v647_v56 = vmul.f32 %v634_v39, %v629_v43  ;;  %p1081_p13 = por %p1080_p12, %p1079_p11 }
 0x1bb   :  { %v623_v35 = vpop.permute.xlu1 %622  ;;  %979 = vmatpush1.bf16.msra.mxu1 %v978_v29 }
 0x1bc   :  { %v625_v30 = vpop.permute.xlu0 %624  ;;  %v628_v47 = vsel %vm626_vm6, %v621_v31, %v623_v35  ;;  %p1082_p0 = pnand %p1081_p13, %p1075_p10 }
 0x1bd   :  { %v627_v53 = vsel %vm626_vm6, %v623_v35, %v625_v30  ;;  %v630_v54 = vsel %vm626_vm6, %v625_v30, %v619_v25  ;;  %v648_v59 = vmul.f32 %v638_v40, %v628_v47 }
 0x1be   :  { %v649_v61 = vmul.f32 %v642_v45, %v627_v53  ;;  %v650_v62 = vmul.f32 %v646_v48, %v630_v54 }
 0x1bf   :  { %v656_v33 = vpop.permute.xlu1 %655 }
 0x1c0   :  { %v658_v42 = vpop.permute.xlu0 %657 }
 0x1c1   :  { %v666_v38 = vsel %vm663_vm7, %v656_v33, %v658_v42 }
 0x1c2   :  { %v684_v57 = vmul.f32 %v671_v41, %v666_v38 }
 0x1c3   :  { %v660_v55 = vpop.permute.xlu1 %659 }
 0x1c4   :  { %v665_v44 = vsel %vm663_vm7, %v658_v42, %v660_v55  ;;  %v662_v58 = vpop.permute.xlu0 %661  ;;  %v966_v3 = vpack.c.bf16 %v684_v57, %v647_v56 }
 0x1c5   :  { %v685_v60 = vmul.f32 %v675_v46, %v665_v44  ;;  %v664_v49 = vsel %vm663_vm7, %v660_v55, %v662_v58  ;;  %v667_v51 = vsel %vm663_vm7, %v662_v58, %v656_v33 }
 0x1c6   :  { %v686_v63 = vmul.f32 %v679_v52, %v664_v49  ;;  %v687_v0 = vmul.f32 %v683_v50, %v667_v51 }
 0x1c7   :  { %v693_v1 = vpop.permute.xlu1 %692  ;;  %v964_v2 = vpack.c.bf16 %v685_v60, %v648_v59 }
 0x1c8   :  { %v982_v4 = vpack.c.bf16 %v686_v63, %v649_v61  ;;  %v695_v5 = vpop.permute.xlu0 %694  ;;  %v980_v6 = vpack.c.bf16 %v687_v0, %v650_v62 }
 0x1c9   :  { %965 = vmatprep.subr.bf16.mxu0 %v964_v2  ;;  %v703_v9 = vsel %vm700_vm8, %v693_v1, %v695_v5 }
 0x1ca   :  { %967 = vmatpush1.bf16.msra.mxu0 %v966_v3  ;;  %981 = vmatprep.subr.bf16.mxu1 %v980_v6  ;;  %v721_v18 = vmul.f32 %v946_v8, %v703_v9 }
 0x1cb   :  { %v697_v10 = vpop.permute.xlu1 %696  ;;  %983 = vmatpush1.bf16.msra.mxu1 %v982_v4 }
 0x1cc   :  { %v702_v13 = vsel %vm700_vm8, %v695_v5, %v697_v10  ;;  %v699_v14 = vpop.permute.xlu0 %698 }
 0x1cd   :  { %v722_v15 = vmul.f32 %v947_v7, %v702_v13  ;;  %v701_v16 = vsel %vm700_vm8, %v697_v10, %v699_v14  ;;  %v704_v17 = vsel %vm700_vm8, %v699_v14, %v693_v1 }
 0x1ce   :  { %v723_v19 = vmul.f32 %v948_v11, %v701_v16  ;;  %v724_v20 = vmul.f32 %v949_v12, %v704_v17 }
 0x1cf   :  { %792 = vmatprep.subr.mxu0 %v722_v15 }
 0x1d0   :  { %793 = vmatpush1.msra.mxu0 %v721_v18  ;;  %863 = vmatprep.subr.mxu1 %v724_v20 }
 0x1d1   :  { %864 = vmatpush1.msra.mxu1 %v723_v19  ;;  %950 = vmatmul.mubr.msk.f32.vlgmr.msra.gmra.mrb[2].mxu0 %vm772_vm9, %v729_v21 }
 0x1d2   :  { %951 = vmatmul.mubr.msk.f32.vlgmr.msra.gmra.mrb[2].mxu1 %vm772_vm9, %v729_v21 }
 0x1dc   :  { %v770_v22 = vpop.permute.xlu1 %769 }
 0x2a4   :  { %v842_v23 = vpop.f32.mrb[2].mxu0 }
 0x2a5   :  { %v913_v24 = vpop.f32.mrb[2].mxu1  ;;  %v843_v28 = vadd.f32 %v842_v23, %v770_v22  ;;  %v844_v37 = vpop.f32.mrb[3].mxu0 }
 0x2a6   :  { %v914_v25 = vadd.f32 %v913_v24, %v770_v22  ;;  %v845_v26 = vadd.f32 %v844_v37, %v770_v22  ;;  %v915_v27 = vpop.f32.mrb[3].mxu1 }
 0x2a7   :  { %v918_v29 = vmax.f32 %v843_v28, 0.0  ;;  %v916_v31 = vadd.f32 %v915_v27, %v770_v22 }
 0x2a8   :  { %v920_v34 = vmax.f32 %v914_v25, 0.0  ;;  %v919_v35 = vmax.f32 %v845_v26, 0.0 }
 0x2a9   :  { %922 = vst [vmem:[#allocation9] sm:$0xff] %v918_v29  ;;  %v921_v36 = vmax.f32 %v916_v31, 0.0 }
 0x2aa   :  { %924 = vst [vmem:[#allocation9 + $0x10] sm:$0xff] %v920_v34  ;;  %923 = vst [vmem:[#allocation9 + $0x8] sm:$0xff] %v919_v35 }
 0x2ab   :  { %925 = vst [vmem:[#allocation9 + $0x18] sm:$0xff] %v921_v36 }
 0x2ac   :  { %1085 = shalt.err (!%p1082_p0)
}
 0x2ad   :  { %s1086_s25 = scalar_lea.hbm %s1425_s9, 512 }
 0x2ae   :  { %p1087_p1 = scmp.ne.s32.totalorder %s1425_s9, %s1086_s25  ;;  %p1090_p2 = scmp.lt.u32.totalorder %s1086_s25, %s1425_s9 }
 0x2b0   :  { %p1092_p3 = pnand %p1090_p2, %p1087_p1 }
 0x2b2   :  { %1095 = shalt.err (!%p1092_p3)
}
 0x2b3   :  { %935 = dma.vmem_to_hbm [thread:$0]  %s933_s22, 512, %s1425_s9, [#allocation5]  }
 0x2b4   :  { %1100 = dma.done.wait [#allocation5], 512  }
 0x2b5   :  { %1101 = vsyncadd [#allocation5], 4294966784 }
 0x2b6   :  { %939 = vsyncpa [#allocation4], 1 }
 0x2b7   :  { %940 = vsyncpa [#allocation7], 1 }
 0x2b8   :  { %941 = vsyncpa [#allocation5], 1 }

</bundles_post_ra>
